<compile_context>
chip_gen: v7x
topology: tpu7x:2x2x1
jax: 0.10.0
libtpu: 0.0.40
codegen_flags: <defaults>
</compile_context>

<pallas_src>
import jax
import jax.numpy as jnp
from jax import lax
from jax.experimental import pallas as pl
from jax.experimental.pallas import tpu as pltpu


def rnn_net_kernel(x_ref, h0_ref, wih_ref, whh_ref, b_ref,
                   w1_ref, b1_ref, wo_ref, bo_ref, out_ref):
    """x_ref: (T, B, F) bf16; h0_ref: (B, H) f32;
    wih_ref: (F, 4H) bf16, i/f/o columns pre-scaled by 0.5;
    whh_ref: (H, 4H) bf16, i/f/o columns pre-scaled by 0.5;
    b_ref: (1, 4H) f32 (= b_ih + b_hh, i/f/o pre-scaled by 0.5);
    w1_ref: (H, H) f32; b1_ref: (1, H) f32;
    wo_ref: (1, H) f32 (row vector of linearOut); bo_ref: (1, 1) f32;
    out_ref: (B, 1) f32."""
    T, B, F = x_ref.shape
    H = whh_ref.shape[0]
    G = 4 * H

    # ---- Hoisted input projection (+ fused bias): one big bf16 MXU matmul ---
    # Kept as a VALUE (no VMEM scratch round-trip): T*B*4H f32 = 8 vregs here.
    x_all = x_ref[...].reshape(T * B, F)
    gin = (jnp.dot(x_all, wih_ref[...], preferred_element_type=jnp.float32)
           + b_ref[...]).reshape(T, B, G)

    # Loop-invariant hoists (JAX does not CSE broadcast_in_dim).
    whh = whh_ref[...]                                  # (H, 4H) bf16, reused every step
    lane = lax.broadcasted_iota(jnp.int32, (B, G), 1)
    g_mask = (lane >= 2 * H) & (lane < 3 * H)           # g-gate lanes [2H:3H]

    h = h0_ref[...].astype(jnp.float32)
    c = h                                               # PyTorch call uses (init_hc, init_hc)

    # Fully unrolled time loop with STATIC t (gin[t] is a free static slice).
    for t in range(T):
        # Serial chain per step: one small bf16 MXU matmul + one EUP pass.
        gates = gin[t] + jnp.dot(h.astype(jnp.bfloat16), whh,
                                 preferred_element_type=jnp.float32)
        # Single transcendental pass: i/f/o pre-activations arrive pre-halved,
        # so sigmoid(z) = 0.5*tanh(z/2) + 0.5; g lanes are plain tanh.
        y = jnp.tanh(gates)                              # full (B, 4H) EUP pass
        act = jnp.where(g_mask, y, 0.5 * y + 0.5)        # VPU fix-up (free slot)
        i = act[:, 0 * H:1 * H]
        f = act[:, 1 * H:2 * H]
        g = act[:, 2 * H:3 * H]
        o = act[:, 3 * H:4 * H]
        c = f * c + i * g                                # f32 state
        h = o * jnp.tanh(c)                              # f32 state

    # ---- Head: relu -> linear1 -> relu -> linearOut (lane reduction) --------
    z = jnp.maximum(h, 0.0)
    z = jnp.dot(z, w1_ref[...], preferred_element_type=jnp.float32) + b1_ref[...]
    z = jnp.maximum(z, 0.0)
    yout = jnp.sum(z * wo_ref[...], axis=-1, keepdims=True) + bo_ref[...]
    out_ref[...] = yout.astype(out_ref.dtype)


def rnn_net_forward(x_btf, init_hc, params):
    """x_btf: (B, T, F) batch-first (PyTorch convention); init_hc: (1, B, H).
    Returns (B, 1) float32, matching RNNNet.forward."""
    B, T, F = x_btf.shape
    H = init_hc.shape[-1]
    G = 4 * H

    x_tbf = jnp.transpose(x_btf, (1, 0, 2)).astype(jnp.bfloat16)   # (T, B, F) time-major
    h0 = init_hc[0].astype(jnp.float32)                            # (B, H)

    # Pre-scale i/f/o gate columns by 0.5 (sigmoid-from-tanh identity); the g
    # block [2H:3H] is left untouched.  0.5 is exact in bf16.
    cols = jnp.arange(G)
    ifo_scale = jnp.where((cols >= 2 * H) & (cols < 3 * H), 1.0, 0.5).astype(jnp.float32)

    wih_t = (params["w_ih"].T * ifo_scale).astype(jnp.bfloat16)    # (F, 4H)
    whh_t = (params["w_hh"].T * ifo_scale).astype(jnp.bfloat16)    # (H, 4H)
    b = ((params["b_ih"] + params["b_hh"]) * ifo_scale).reshape(1, G).astype(jnp.float32)
    w1_t = params["w1"].T.astype(jnp.float32)                      # (H, H)
    b1 = params["b1"].reshape(1, H).astype(jnp.float32)
    wo_row = params["w_out"].reshape(1, H).astype(jnp.float32)     # (1, H)
    bo = params["b_out"].reshape(1, 1).astype(jnp.float32)

    flops = (2 * T * B * F * G        # hoisted input projection
             + 2 * T * B * H * G      # recurrent matmuls
             + 2 * B * H * H          # linear1
             + 2 * B * H)             # output reduction
    transcendentals = T * B * (G + H)   # one full-width tanh + tanh(c) per step
    bytes_accessed = (2 * (T * B * F + F * G + H * G)          # bf16 operands
                      + 4 * (B * H + G + H * H + H + H + 1 + B))

    vmem = pl.BlockSpec(memory_space=pltpu.MemorySpace.VMEM)
    return pl.pallas_call(
        rnn_net_kernel,
        out_shape=jax.ShapeDtypeStruct((B, 1), jnp.float32),
        in_specs=[vmem] * 9,
        out_specs=vmem,
        compiler_params=pltpu.CompilerParams(
            vmem_limit_bytes=8 * 1024 * 1024),   # footprint << 1 MiB; generous headroom
        cost_estimate=pl.CostEstimate(flops=flops,
                                      transcendentals=transcendentals,
                                      bytes_accessed=bytes_accessed),
    )(x_tbf, h0, wih_t, whh_t, b, w1_t, b1, wo_row, bo)


def rnn_net_reference(x_btf, init_hc, params):
    """Pure-JAX f32 reference mirroring torch.nn.LSTM (gate order i,f,g,o) + MLP head."""
    B, T, F = x_btf.shape
    H = init_hc.shape[-1]
    h = init_hc[0]
    c = init_hc[0]
    b = params["b_ih"] + params["b_hh"]
    for t in range(T):
        gates = x_btf[:, t, :] @ params["w_ih"].T + h @ params["w_hh"].T + b
        i = jax.nn.sigmoid(gates[:, 0:H])
        f = jax.nn.sigmoid(gates[:, H:2 * H])
        g = jnp.tanh(gates[:, 2 * H:3 * H])
        o = jax.nn.sigmoid(gates[:, 3 * H:4 * H])
        c = f * c + i * g
        h = o * jnp.tanh(c)
    z = jnp.maximum(h, 0.0)
    z = jnp.maximum(z @ params["w1"].T + params["b1"], 0.0)
    return z @ params["w_out"].T + params["b_out"]


def init_params(key, n_hidden, n_features):
    """Deterministic init; shapes match torch.nn.LSTM / Linear defaults."""
    k = 1.0 / jnp.sqrt(jnp.float32(n_hidden))
    keys = jax.random.split(key, 8)
    u = lambda kk, shape: jax.random.uniform(kk, shape, jnp.float32, -k, k)
    return {
        "w_ih": u(keys[0], (4 * n_hidden, n_features)),
        "w_hh": u(keys[1], (4 * n_hidden, n_hidden)),
        "b_ih": u(keys[2], (4 * n_hidden,)),
        "b_hh": u(keys[3], (4 * n_hidden,)),
        "w1":   u(keys[4], (n_hidden, n_hidden)),
        "b1":   u(keys[5], (n_hidden,)),
        "w_out": u(keys[6], (1, n_hidden)),
        "b_out": u(keys[7], (1,)),
    }


if __name__ == "__main__":
    B, T, F, H = 8, 8, 16, 32

    key = jax.random.PRNGKey(0)
    k_x, k_h, k_p = jax.random.split(key, 3)
    x = jax.random.normal(k_x, (B, T, F), jnp.float32)           # batch-first, like PyTorch
    init_hc = jax.random.normal(k_h, (1, B, H), jnp.float32)     # used as both h0 and c0
    params = init_params(k_p, H, F)

    out = rnn_net_forward(x, init_hc, params)
    out = jax.block_until_ready(out)

    ref = rnn_net_reference(x, init_hc, params)
    assert out.shape == (B, 1), out.shape
    # Kernel feeds the MXU bf16 operands (state / accumulation stay f32), so
    # compare against the pure-f32 reference with a bf16-appropriate tolerance.
    assert jnp.allclose(out, ref, atol=3e-2, rtol=3e-2), (out, ref)

    print("KERNEL_OK")
</pallas_src>

<mosaic_0001>
module attributes {stable_mosaic.version = 11 : i64} {
  func.func @rnn_net_kernel(%arg0: memref<8x8x16xbf16, #tpu.memory_space<vmem>>, %arg1: memref<8x32xf32, #tpu.memory_space<vmem>>, %arg2: memref<16x128xbf16, #tpu.memory_space<vmem>>, %arg3: memref<32x128xbf16, #tpu.memory_space<vmem>>, %arg4: memref<1x128xf32, #tpu.memory_space<vmem>>, %arg5: memref<32x32xf32, #tpu.memory_space<vmem>>, %arg6: memref<1x32xf32, #tpu.memory_space<vmem>>, %arg7: memref<1x32xf32, #tpu.memory_space<vmem>>, %arg8: memref<1x1xf32, #tpu.memory_space<vmem>>, %arg9: memref<8x1xf32, #tpu.memory_space<vmem>>) attributes {dimension_semantics = [], scalar_prefetch = 0 : i64, scratch_operands = 0 : i64, tpu.core_type = #tpu.core_type<tc>} {
    %c0 = arith.constant 0 : index
    %c0_0 = arith.constant 0 : index
    %c0_1 = arith.constant 0 : index
    %0 = vector.load %arg0[%c0, %c0_0, %c0_1] : memref<8x8x16xbf16, #tpu.memory_space<vmem>>, vector<8x8x16xbf16>
    %1 = vector.shape_cast %0 : vector<8x8x16xbf16> to vector<64x16xbf16>
    %c0_2 = arith.constant 0 : index
    %c0_3 = arith.constant 0 : index
    %2 = vector.load %arg2[%c0_2, %c0_3] : memref<16x128xbf16, #tpu.memory_space<vmem>>, vector<16x128xbf16>
    %cst = arith.constant dense<0.000000e+00> : vector<64x128xf32>
    %3 = tpu.matmul %1, %2, %cst {dimension_numbers = #tpu.dot_dimension_numbers<[1], [0], [0], [1], [0, 0, 1, 1], [], []>} : vector<64x16xbf16>, vector<16x128xbf16>, vector<64x128xf32> -> vector<64x128xf32>
    %c0_4 = arith.constant 0 : index
    %c0_5 = arith.constant 0 : index
    %4 = vector.load %arg4[%c0_4, %c0_5] : memref<1x128xf32, #tpu.memory_space<vmem>>, vector<1x128xf32>
    %5 = vector.broadcast %4 : vector<1x128xf32> to vector<64x128xf32>
    %6 = arith.addf %3, %5 : vector<64x128xf32>
    %7 = vector.shape_cast %6 : vector<64x128xf32> to vector<8x8x128xf32>
    %c0_6 = arith.constant 0 : index
    %c0_7 = arith.constant 0 : index
    %8 = vector.load %arg3[%c0_6, %c0_7] : memref<32x128xbf16, #tpu.memory_space<vmem>>, vector<32x128xbf16>
    %9 = tpu.iota {dimensions = array<i32: 1>} : vector<8x128xi32>
    %c64_i32 = arith.constant 64 : i32
    %10 = vector.broadcast %c64_i32 : i32 to vector<8x128xi32>
    %11 = arith.cmpi sge, %9, %10 : vector<8x128xi32>
    %c96_i32 = arith.constant 96 : i32
    %12 = vector.broadcast %c96_i32 : i32 to vector<8x128xi32>
    %13 = arith.cmpi slt, %9, %12 : vector<8x128xi32>
    %14 = arith.andi %11, %13 : vector<8x128xi1>
    %c0_8 = arith.constant 0 : index
    %c0_9 = arith.constant 0 : index
    %15 = vector.load %arg1[%c0_8, %c0_9] : memref<8x32xf32, #tpu.memory_space<vmem>>, vector<8x32xf32>
    %16 = vector.extract_strided_slice %7 {offsets = [0, 0, 0], sizes = [1, 8, 128], strides = [1, 1, 1]} : vector<8x8x128xf32> to vector<1x8x128xf32>
    %17 = vector.shape_cast %16 : vector<1x8x128xf32> to vector<8x128xf32>
    %18 = arith.truncf %15 : vector<8x32xf32> to vector<8x32xbf16>
    %cst_10 = arith.constant dense<0.000000e+00> : vector<8x128xf32>
    %19 = tpu.matmul %18, %8, %cst_10 {dimension_numbers = #tpu.dot_dimension_numbers<[1], [0], [0], [1], [0, 0, 1, 1], [], []>} : vector<8x32xbf16>, vector<32x128xbf16>, vector<8x128xf32> -> vector<8x128xf32>
    %20 = arith.addf %17, %19 : vector<8x128xf32>
    %21 = math.tanh %20 : vector<8x128xf32>
    %cst_11 = arith.constant 5.000000e-01 : f32
    %22 = vector.broadcast %cst_11 : f32 to vector<8x128xf32>
    %23 = arith.mulf %22, %21 : vector<8x128xf32>
    %cst_12 = arith.constant 5.000000e-01 : f32
    %24 = vector.broadcast %cst_12 : f32 to vector<8x128xf32>
    %25 = arith.addf %23, %24 : vector<8x128xf32>
    %26 = arith.select %14, %21, %25 : vector<8x128xi1>, vector<8x128xf32>
    %27 = vector.extract_strided_slice %26 {offsets = [0, 0], sizes = [8, 32], strides = [1, 1]} : vector<8x128xf32> to vector<8x32xf32>
    %28 = vector.extract_strided_slice %26 {offsets = [0, 32], sizes = [8, 32], strides = [1, 1]} : vector<8x128xf32> to vector<8x32xf32>
    %29 = vector.extract_strided_slice %26 {offsets = [0, 64], sizes = [8, 32], strides = [1, 1]} : vector<8x128xf32> to vector<8x32xf32>
    %30 = vector.extract_strided_slice %26 {offsets = [0, 96], sizes = [8, 32], strides = [1, 1]} : vector<8x128xf32> to vector<8x32xf32>
    %31 = arith.mulf %28, %15 : vector<8x32xf32>
    %32 = arith.mulf %27, %29 : vector<8x32xf32>
    %33 = arith.addf %31, %32 : vector<8x32xf32>
    %34 = math.tanh %33 : vector<8x32xf32>
    %35 = arith.mulf %30, %34 : vector<8x32xf32>
    %36 = vector.extract_strided_slice %7 {offsets = [1, 0, 0], sizes = [1, 8, 128], strides = [1, 1, 1]} : vector<8x8x128xf32> to vector<1x8x128xf32>
    %37 = vector.shape_cast %36 : vector<1x8x128xf32> to vector<8x128xf32>
    %38 = arith.truncf %35 : vector<8x32xf32> to vector<8x32xbf16>
    %cst_13 = arith.constant dense<0.000000e+00> : vector<8x128xf32>
    %39 = tpu.matmul %38, %8, %cst_13 {dimension_numbers = #tpu.dot_dimension_numbers<[1], [0], [0], [1], [0, 0, 1, 1], [], []>} : vector<8x32xbf16>, vector<32x128xbf16>, vector<8x128xf32> -> vector<8x128xf32>
    %40 = arith.addf %37, %39 : vector<8x128xf32>
    %41 = math.tanh %40 : vector<8x128xf32>
    %cst_14 = arith.constant 5.000000e-01 : f32
    %42 = vector.broadcast %cst_14 : f32 to vector<8x128xf32>
    %43 = arith.mulf %42, %41 : vector<8x128xf32>
    %cst_15 = arith.constant 5.000000e-01 : f32
    %44 = vector.broadcast %cst_15 : f32 to vector<8x128xf32>
    %45 = arith.addf %43, %44 : vector<8x128xf32>
    %46 = arith.select %14, %41, %45 : vector<8x128xi1>, vector<8x128xf32>
    %47 = vector.extract_strided_slice %46 {offsets = [0, 0], sizes = [8, 32], strides = [1, 1]} : vector<8x128xf32> to vector<8x32xf32>
    %48 = vector.extract_strided_slice %46 {offsets = [0, 32], sizes = [8, 32], strides = [1, 1]} : vector<8x128xf32> to vector<8x32xf32>
    %49 = vector.extract_strided_slice %46 {offsets = [0, 64], sizes = [8, 32], strides = [1, 1]} : vector<8x128xf32> to vector<8x32xf32>
    %50 = vector.extract_strided_slice %46 {offsets = [0, 96], sizes = [8, 32], strides = [1, 1]} : vector<8x128xf32> to vector<8x32xf32>
    %51 = arith.mulf %48, %33 : vector<8x32xf32>
    %52 = arith.mulf %47, %49 : vector<8x32xf32>
    %53 = arith.addf %51, %52 : vector<8x32xf32>
    %54 = math.tanh %53 : vector<8x32xf32>
    %55 = arith.mulf %50, %54 : vector<8x32xf32>
    %56 = vector.extract_strided_slice %7 {offsets = [2, 0, 0], sizes = [1, 8, 128], strides = [1, 1, 1]} : vector<8x8x128xf32> to vector<1x8x128xf32>
    %57 = vector.shape_cast %56 : vector<1x8x128xf32> to vector<8x128xf32>
    %58 = arith.truncf %55 : vector<8x32xf32> to vector<8x32xbf16>
    %cst_16 = arith.constant dense<0.000000e+00> : vector<8x128xf32>
    %59 = tpu.matmul %58, %8, %cst_16 {dimension_numbers = #tpu.dot_dimension_numbers<[1], [0], [0], [1], [0, 0, 1, 1], [], []>} : vector<8x32xbf16>, vector<32x128xbf16>, vector<8x128xf32> -> vector<8x128xf32>
    %60 = arith.addf %57, %59 : vector<8x128xf32>
    %61 = math.tanh %60 : vector<8x128xf32>
    %cst_17 = arith.constant 5.000000e-01 : f32
    %62 = vector.broadcast %cst_17 : f32 to vector<8x128xf32>
    %63 = arith.mulf %62, %61 : vector<8x128xf32>
    %cst_18 = arith.constant 5.000000e-01 : f32
    %64 = vector.broadcast %cst_18 : f32 to vector<8x128xf32>
    %65 = arith.addf %63, %64 : vector<8x128xf32>
    %66 = arith.select %14, %61, %65 : vector<8x128xi1>, vector<8x128xf32>
    %67 = vector.extract_strided_slice %66 {offsets = [0, 0], sizes = [8, 32], strides = [1, 1]} : vector<8x128xf32> to vector<8x32xf32>
    %68 = vector.extract_strided_slice %66 {offsets = [0, 32], sizes = [8, 32], strides = [1, 1]} : vector<8x128xf32> to vector<8x32xf32>
    %69 = vector.extract_strided_slice %66 {offsets = [0, 64], sizes = [8, 32], strides = [1, 1]} : vector<8x128xf32> to vector<8x32xf32>
    %70 = vector.extract_strided_slice %66 {offsets = [0, 96], sizes = [8, 32], strides = [1, 1]} : vector<8x128xf32> to vector<8x32xf32>
    %71 = arith.mulf %68, %53 : vector<8x32xf32>
    %72 = arith.mulf %67, %69 : vector<8x32xf32>
    %73 = arith.addf %71, %72 : vector<8x32xf32>
    %74 = math.tanh %73 : vector<8x32xf32>
    %75 = arith.mulf %70, %74 : vector<8x32xf32>
    %76 = vector.extract_strided_slice %7 {offsets = [3, 0, 0], sizes = [1, 8, 128], strides = [1, 1, 1]} : vector<8x8x128xf32> to vector<1x8x128xf32>
    %77 = vector.shape_cast %76 : vector<1x8x128xf32> to vector<8x128xf32>
    %78 = arith.truncf %75 : vector<8x32xf32> to vector<8x32xbf16>
    %cst_19 = arith.constant dense<0.000000e+00> : vector<8x128xf32>
    %79 = tpu.matmul %78, %8, %cst_19 {dimension_numbers = #tpu.dot_dimension_numbers<[1], [0], [0], [1], [0, 0, 1, 1], [], []>} : vector<8x32xbf16>, vector<32x128xbf16>, vector<8x128xf32> -> vector<8x128xf32>
    %80 = arith.addf %77, %79 : vector<8x128xf32>
    %81 = math.tanh %80 : vector<8x128xf32>
    %cst_20 = arith.constant 5.000000e-01 : f32
    %82 = vector.broadcast %cst_20 : f32 to vector<8x128xf32>
    %83 = arith.mulf %82, %81 : vector<8x128xf32>
    %cst_21 = arith.constant 5.000000e-01 : f32
    %84 = vector.broadcast %cst_21 : f32 to vector<8x128xf32>
    %85 = arith.addf %83, %84 : vector<8x128xf32>
    %86 = arith.select %14, %81, %85 : vector<8x128xi1>, vector<8x128xf32>
    %87 = vector.extract_strided_slice %86 {offsets = [0, 0], sizes = [8, 32], strides = [1, 1]} : vector<8x128xf32> to vector<8x32xf32>
    %88 = vector.extract_strided_slice %86 {offsets = [0, 32], sizes = [8, 32], strides = [1, 1]} : vector<8x128xf32> to vector<8x32xf32>
    %89 = vector.extract_strided_slice %86 {offsets = [0, 64], sizes = [8, 32], strides = [1, 1]} : vector<8x128xf32> to vector<8x32xf32>
    %90 = vector.extract_strided_slice %86 {offsets = [0, 96], sizes = [8, 32], strides = [1, 1]} : vector<8x128xf32> to vector<8x32xf32>
    %91 = arith.mulf %88, %73 : vector<8x32xf32>
    %92 = arith.mulf %87, %89 : vector<8x32xf32>
    %93 = arith.addf %91, %92 : vector<8x32xf32>
    %94 = math.tanh %93 : vector<8x32xf32>
    %95 = arith.mulf %90, %94 : vector<8x32xf32>
    %96 = vector.extract_strided_slice %7 {offsets = [4, 0, 0], sizes = [1, 8, 128], strides = [1, 1, 1]} : vector<8x8x128xf32> to vector<1x8x128xf32>
    %97 = vector.shape_cast %96 : vector<1x8x128xf32> to vector<8x128xf32>
    %98 = arith.truncf %95 : vector<8x32xf32> to vector<8x32xbf16>
    %cst_22 = arith.constant dense<0.000000e+00> : vector<8x128xf32>
    %99 = tpu.matmul %98, %8, %cst_22 {dimension_numbers = #tpu.dot_dimension_numbers<[1], [0], [0], [1], [0, 0, 1, 1], [], []>} : vector<8x32xbf16>, vector<32x128xbf16>, vector<8x128xf32> -> vector<8x128xf32>
    %100 = arith.addf %97, %99 : vector<8x128xf32>
    %101 = math.tanh %100 : vector<8x128xf32>
    %cst_23 = arith.constant 5.000000e-01 : f32
    %102 = vector.broadcast %cst_23 : f32 to vector<8x128xf32>
    %103 = arith.mulf %102, %101 : vector<8x128xf32>
    %cst_24 = arith.constant 5.000000e-01 : f32
    %104 = vector.broadcast %cst_24 : f32 to vector<8x128xf32>
    %105 = arith.addf %103, %104 : vector<8x128xf32>
    %106 = arith.select %14, %101, %105 : vector<8x128xi1>, vector<8x128xf32>
    %107 = vector.extract_strided_slice %106 {offsets = [0, 0], sizes = [8, 32], strides = [1, 1]} : vector<8x128xf32> to vector<8x32xf32>
    %108 = vector.extract_strided_slice %106 {offsets = [0, 32], sizes = [8, 32], strides = [1, 1]} : vector<8x128xf32> to vector<8x32xf32>
    %109 = vector.extract_strided_slice %106 {offsets = [0, 64], sizes = [8, 32], strides = [1, 1]} : vector<8x128xf32> to vector<8x32xf32>
    %110 = vector.extract_strided_slice %106 {offsets = [0, 96], sizes = [8, 32], strides = [1, 1]} : vector<8x128xf32> to vector<8x32xf32>
    %111 = arith.mulf %108, %93 : vector<8x32xf32>
    %112 = arith.mulf %107, %109 : vector<8x32xf32>
    %113 = arith.addf %111, %112 : vector<8x32xf32>
    %114 = math.tanh %113 : vector<8x32xf32>
    %115 = arith.mulf %110, %114 : vector<8x32xf32>
    %116 = vector.extract_strided_slice %7 {offsets = [5, 0, 0], sizes = [1, 8, 128], strides = [1, 1, 1]} : vector<8x8x128xf32> to vector<1x8x128xf32>
    %117 = vector.shape_cast %116 : vector<1x8x128xf32> to vector<8x128xf32>
    %118 = arith.truncf %115 : vector<8x32xf32> to vector<8x32xbf16>
    %cst_25 = arith.constant dense<0.000000e+00> : vector<8x128xf32>
    %119 = tpu.matmul %118, %8, %cst_25 {dimension_numbers = #tpu.dot_dimension_numbers<[1], [0], [0], [1], [0, 0, 1, 1], [], []>} : vector<8x32xbf16>, vector<32x128xbf16>, vector<8x128xf32> -> vector<8x128xf32>
    %120 = arith.addf %117, %119 : vector<8x128xf32>
    %121 = math.tanh %120 : vector<8x128xf32>
    %cst_26 = arith.constant 5.000000e-01 : f32
    %122 = vector.broadcast %cst_26 : f32 to vector<8x128xf32>
    %123 = arith.mulf %122, %121 : vector<8x128xf32>
    %cst_27 = arith.constant 5.000000e-01 : f32
    %124 = vector.broadcast %cst_27 : f32 to vector<8x128xf32>
    %125 = arith.addf %123, %124 : vector<8x128xf32>
    %126 = arith.select %14, %121, %125 : vector<8x128xi1>, vector<8x128xf32>
    %127 = vector.extract_strided_slice %126 {offsets = [0, 0], sizes = [8, 32], strides = [1, 1]} : vector<8x128xf32> to vector<8x32xf32>
    %128 = vector.extract_strided_slice %126 {offsets = [0, 32], sizes = [8, 32], strides = [1, 1]} : vector<8x128xf32> to vector<8x32xf32>
    %129 = vector.extract_strided_slice %126 {offsets = [0, 64], sizes = [8, 32], strides = [1, 1]} : vector<8x128xf32> to vector<8x32xf32>
    %130 = vector.extract_strided_slice %126 {offsets = [0, 96], sizes = [8, 32], strides = [1, 1]} : vector<8x128xf32> to vector<8x32xf32>
    %131 = arith.mulf %128, %113 : vector<8x32xf32>
    %132 = arith.mulf %127, %129 : vector<8x32xf32>
    %133 = arith.addf %131, %132 : vector<8x32xf32>
    %134 = math.tanh %133 : vector<8x32xf32>
    %135 = arith.mulf %130, %134 : vector<8x32xf32>
    %136 = vector.extract_strided_slice %7 {offsets = [6, 0, 0], sizes = [1, 8, 128], strides = [1, 1, 1]} : vector<8x8x128xf32> to vector<1x8x128xf32>
    %137 = vector.shape_cast %136 : vector<1x8x128xf32> to vector<8x128xf32>
    %138 = arith.truncf %135 : vector<8x32xf32> to vector<8x32xbf16>
    %cst_28 = arith.constant dense<0.000000e+00> : vector<8x128xf32>
    %139 = tpu.matmul %138, %8, %cst_28 {dimension_numbers = #tpu.dot_dimension_numbers<[1], [0], [0], [1], [0, 0, 1, 1], [], []>} : vector<8x32xbf16>, vector<32x128xbf16>, vector<8x128xf32> -> vector<8x128xf32>
    %140 = arith.addf %137, %139 : vector<8x128xf32>
    %141 = math.tanh %140 : vector<8x128xf32>
    %cst_29 = arith.constant 5.000000e-01 : f32
    %142 = vector.broadcast %cst_29 : f32 to vector<8x128xf32>
    %143 = arith.mulf %142, %141 : vector<8x128xf32>
    %cst_30 = arith.constant 5.000000e-01 : f32
    %144 = vector.broadcast %cst_30 : f32 to vector<8x128xf32>
    %145 = arith.addf %143, %144 : vector<8x128xf32>
    %146 = arith.select %14, %141, %145 : vector<8x128xi1>, vector<8x128xf32>
    %147 = vector.extract_strided_slice %146 {offsets = [0, 0], sizes = [8, 32], strides = [1, 1]} : vector<8x128xf32> to vector<8x32xf32>
    %148 = vector.extract_strided_slice %146 {offsets = [0, 32], sizes = [8, 32], strides = [1, 1]} : vector<8x128xf32> to vector<8x32xf32>
    %149 = vector.extract_strided_slice %146 {offsets = [0, 64], sizes = [8, 32], strides = [1, 1]} : vector<8x128xf32> to vector<8x32xf32>
    %150 = vector.extract_strided_slice %146 {offsets = [0, 96], sizes = [8, 32], strides = [1, 1]} : vector<8x128xf32> to vector<8x32xf32>
    %151 = arith.mulf %148, %133 : vector<8x32xf32>
    %152 = arith.mulf %147, %149 : vector<8x32xf32>
    %153 = arith.addf %151, %152 : vector<8x32xf32>
    %154 = math.tanh %153 : vector<8x32xf32>
    %155 = arith.mulf %150, %154 : vector<8x32xf32>
    %156 = vector.extract_strided_slice %7 {offsets = [7, 0, 0], sizes = [1, 8, 128], strides = [1, 1, 1]} : vector<8x8x128xf32> to vector<1x8x128xf32>
    %157 = vector.shape_cast %156 : vector<1x8x128xf32> to vector<8x128xf32>
    %158 = arith.truncf %155 : vector<8x32xf32> to vector<8x32xbf16>
    %cst_31 = arith.constant dense<0.000000e+00> : vector<8x128xf32>
    %159 = tpu.matmul %158, %8, %cst_31 {dimension_numbers = #tpu.dot_dimension_numbers<[1], [0], [0], [1], [0, 0, 1, 1], [], []>} : vector<8x32xbf16>, vector<32x128xbf16>, vector<8x128xf32> -> vector<8x128xf32>
    %160 = arith.addf %157, %159 : vector<8x128xf32>
    %161 = math.tanh %160 : vector<8x128xf32>
    %cst_32 = arith.constant 5.000000e-01 : f32
    %162 = vector.broadcast %cst_32 : f32 to vector<8x128xf32>
    %163 = arith.mulf %162, %161 : vector<8x128xf32>
    %cst_33 = arith.constant 5.000000e-01 : f32
    %164 = vector.broadcast %cst_33 : f32 to vector<8x128xf32>
    %165 = arith.addf %163, %164 : vector<8x128xf32>
    %166 = arith.select %14, %161, %165 : vector<8x128xi1>, vector<8x128xf32>
    %167 = vector.extract_strided_slice %166 {offsets = [0, 0], sizes = [8, 32], strides = [1, 1]} : vector<8x128xf32> to vector<8x32xf32>
    %168 = vector.extract_strided_slice %166 {offsets = [0, 32], sizes = [8, 32], strides = [1, 1]} : vector<8x128xf32> to vector<8x32xf32>
    %169 = vector.extract_strided_slice %166 {offsets = [0, 64], sizes = [8, 32], strides = [1, 1]} : vector<8x128xf32> to vector<8x32xf32>
    %170 = vector.extract_strided_slice %166 {offsets = [0, 96], sizes = [8, 32], strides = [1, 1]} : vector<8x128xf32> to vector<8x32xf32>
    %171 = arith.mulf %168, %153 : vector<8x32xf32>
    %172 = arith.mulf %167, %169 : vector<8x32xf32>
    %173 = arith.addf %171, %172 : vector<8x32xf32>
    %174 = math.tanh %173 : vector<8x32xf32>
    %175 = arith.mulf %170, %174 : vector<8x32xf32>
    %cst_34 = arith.constant 0.000000e+00 : f32
    %176 = vector.broadcast %cst_34 : f32 to vector<8x32xf32>
    %177 = arith.maximumf %175, %176 : vector<8x32xf32>
    %c0_35 = arith.constant 0 : index
    %c0_36 = arith.constant 0 : index
    %178 = vector.load %arg5[%c0_35, %c0_36] : memref<32x32xf32, #tpu.memory_space<vmem>>, vector<32x32xf32>
    %cst_37 = arith.constant dense<0.000000e+00> : vector<8x32xf32>
    %179 = tpu.matmul %177, %178, %cst_37 {dimension_numbers = #tpu.dot_dimension_numbers<[1], [0], [0], [1], [0, 0, 1, 1], [], []>} : vector<8x32xf32>, vector<32x32xf32>, vector<8x32xf32> -> vector<8x32xf32>
    %c0_38 = arith.constant 0 : index
    %c0_39 = arith.constant 0 : index
    %180 = vector.load %arg6[%c0_38, %c0_39] : memref<1x32xf32, #tpu.memory_space<vmem>>, vector<1x32xf32>
    %181 = vector.broadcast %180 : vector<1x32xf32> to vector<8x32xf32>
    %182 = arith.addf %179, %181 : vector<8x32xf32>
    %cst_40 = arith.constant 0.000000e+00 : f32
    %183 = vector.broadcast %cst_40 : f32 to vector<8x32xf32>
    %184 = arith.maximumf %182, %183 : vector<8x32xf32>
    %c0_41 = arith.constant 0 : index
    %c0_42 = arith.constant 0 : index
    %185 = vector.load %arg7[%c0_41, %c0_42] : memref<1x32xf32, #tpu.memory_space<vmem>>, vector<1x32xf32>
    %186 = vector.broadcast %185 : vector<1x32xf32> to vector<8x32xf32>
    %187 = arith.mulf %184, %186 : vector<8x32xf32>
    %cst_43 = arith.constant dense<0.000000e+00> : vector<8xf32>
    %188 = vector.multi_reduction <add>, %187, %cst_43 [1] : vector<8x32xf32> to vector<8xf32>
    %189 = vector.shape_cast %188 : vector<8xf32> to vector<8x1xf32>
    %c0_44 = arith.constant 0 : index
    %c0_45 = arith.constant 0 : index
    %190 = vector.load %arg8[%c0_44, %c0_45] : memref<1x1xf32, #tpu.memory_space<vmem>>, vector<1x1xf32>
    %191 = vector.broadcast %190 : vector<1x1xf32> to vector<8x1xf32>
    %192 = arith.addf %189, %191 : vector<8x1xf32>
    %c0_46 = arith.constant 0 : index
    %c0_47 = arith.constant 0 : index
    %193 = vector.load %arg9[%c0_46, %c0_47] : memref<8x1xf32, #tpu.memory_space<vmem>>, vector<8x1xf32>
    tpu.vector_store %arg9[%c0_46, %c0_47], %192 {strides = array<i32>} : memref<8x1xf32, #tpu.memory_space<vmem>>, vector<8x1xf32>,
    return
  }
}

</mosaic_0001>

<bundles_post_ra>
// kernel: tpu_custom_call.1
= control target key start
LH: loop header
LB: loop body
LE: loop exit
PB: predicated region body
PF: predicated region fallthrough
CT: control target
= control target key end

     0   :  { %s1490_s0 = inlined_call_operand.hbm [shape: bf16[8,8,16], index: 0, kind: input, shape index: {}]   ;;  %s1491_s1 = inlined_call_operand.hbm [shape: f32[8,32], index: 1, kind: input, shape index: {}]   ;;  %s1492_s2 = inlined_call_operand.vmem [shape: bf16[16,128], index: 2, kind: input, shape index: {}]   ;;  %s1493_s3 = inlined_call_operand.hbm [shape: bf16[32,128], index: 3, kind: input, shape index: {}]   ;;  %s1494_s4 = inlined_call_operand.vmem [shape: f32[1,128], index: 4, kind: input, shape index: {}]   ;;  %s1495_s5 = inlined_call_operand.hbm [shape: f32[32,32], index: 5, kind: input, shape index: {}]   ;;  %s1496_s6 = inlined_call_operand.vmem [shape: f32[1,32], index: 6, kind: input, shape index: {}]   ;;  %s1497_s7 = inlined_call_operand.vmem [shape: f32[1,32], index: 7, kind: input, shape index: {}]   ;;  %s1498_s8 = inlined_call_operand.<no memory space> [shape: f32[1,1], index: 8, kind: input, shape index: {}]   ;;  %s1499_s9 = inlined_call_operand.vmem [shape: f32[8,1], index: 9, kind: output, shape index: {}]  }
   0x1   :  { %v14_v0 = vstv %s1498_s8 }
   0x2   :  { %15 = vst [vmem:[#allocation2] sm:$0x1] %v14_v0 }
   0x3   :  { %16 = vsyncpa [#allocation4], 0 }
   0x4   :  { %17 = vsyncpa [#allocation6], 0 }
   0x5   :  { %18 = vsyncpa [#allocation9], 0  ;;  %s1195_s11 = smov [#allocation5]   ;;  %s1196_s13 = smov [#allocation3]  }
   0x6   :  { %s37_s12 = sshll.u32 %s1195_s11, 4  ;;  %s24_s14 = sshll.u32 %s1196_s13, 4  ;;  %s38_s12 = int_to_ptr.vmem [resolvable:$true] %s37_s12  ;;  %s1260_s14 = int_to_ptr.vmem [resolvable:$true] %s24_s14 }
   0x7   :  { %s1101_s17 = scalar_lea.hbm %s1491_s1, 128 }
   0x8   :  { %p1102_p0 = scmp.ne.s32.totalorder %s1491_s1, %s1101_s17  ;;  %p1105_p1 = scmp.lt.u32.totalorder %s1101_s17, %s1491_s1 }
   0xa   :  { %p1107_p2 = pnand %p1105_p1, %p1102_p0 }
   0xc   :  { %1110 = shalt.err (!%p1107_p2)
}
   0xd   :  { %s1111_s21 = scalar_lea.vmem %s38_s12, 128  ;;  %p1116_p4 = scmp.lt.s32.totalorder %s38_s12, %s38_s12 }
   0xe   :  { %p1112_p3 = scmp.ne.s32.totalorder %s38_s12, %s1111_s21  ;;  %p1117_p5 = scmp.lt.s32.totalorder %s1111_s21, %s1111_s21 }
  0x10   :  { %p1118_p6 = por %p1117_p5, %p1116_p4 }
  0x12   :  { %p1119_p7 = pnand %p1118_p6, %p1112_p3 }
  0x14   :  { %1122 = shalt.err (!%p1119_p7)
}
  0x15   :  { %40 = dma.hbm_to_vmem [thread:$0]  %s1491_s1, 128, %s38_s12, [#allocation6]  }
  0x16   :  { %s1123_s26 = scalar_lea.hbm %s1490_s0, 512 }
  0x17   :  { %p1124_p8 = scmp.ne.s32.totalorder %s1490_s0, %s1123_s26  ;;  %p1127_p9 = scmp.lt.u32.totalorder %s1123_s26, %s1490_s0 }
  0x19   :  { %p1129_p10 = pnand %p1127_p9, %p1124_p8 }
  0x1b   :  { %1132 = shalt.err (!%p1129_p10)
}
  0x1c   :  { %s1133_s10 = scalar_lea.vmem %s1260_s14, 512  ;;  %p1138_p12 = scmp.lt.s32.totalorder %s1260_s14, %s1260_s14 }
  0x1d   :  { %p1134_p11 = scmp.ne.s32.totalorder %s1260_s14, %s1133_s10  ;;  %p1139_p13 = scmp.lt.s32.totalorder %s1133_s10, %s1133_s10 }
  0x1f   :  { %p1140_p0 = por %p1139_p13, %p1138_p12 }
  0x21   :  { %p1141_p1 = pnand %p1140_p0, %p1134_p11 }
  0x23   :  { %1144 = shalt.err (!%p1141_p1)
}
  0x24   :  { %s1197_s1 = smov 64   ;;  %s1198_s11 = smov 4  }
  0x25   :  { %30 = dma.hbm_to_vmem [thread:$0]  %s1490_s0, 512, %s1260_s14, [#allocation4], %s1197_s1, %s1197_s1, %s1198_s11  }
  0x26   :  { %s1199_s15 = smov [#allocation7]   ;;  %s1200_s17 = smov [#allocation8]  }
  0x27   :  { %s48_s16 = sshll.u32 %s1199_s15, 4  ;;  %s62_s18 = sshll.u32 %s1200_s17, 4  ;;  %s49_s16 = int_to_ptr.vmem [resolvable:$true] %s48_s16  ;;  %s1293_s18 = int_to_ptr.vmem [resolvable:$true] %s62_s18 }
  0x28   :  { %s1145_s20 = scalar_lea.hbm %s1493_s3, 256 }
  0x29   :  { %p1146_p2 = scmp.ne.s32.totalorder %s1493_s3, %s1145_s20  ;;  %p1149_p3 = scmp.lt.u32.totalorder %s1145_s20, %s1493_s3 }
  0x2b   :  { %p1151_p4 = pnand %p1149_p3, %p1146_p2 }
  0x2d   :  { %1154 = shalt.err (!%p1151_p4)
}
  0x2e   :  { %s1155_s0 = scalar_lea.vmem %s49_s16, 256  ;;  %p1160_p6 = scmp.lt.s32.totalorder %s49_s16, %s49_s16 }
  0x2f   :  { %p1156_p5 = scmp.ne.s32.totalorder %s49_s16, %s1155_s0  ;;  %p1161_p7 = scmp.lt.s32.totalorder %s1155_s0, %s1155_s0 }
  0x31   :  { %p1162_p8 = por %p1161_p7, %p1160_p6 }
  0x33   :  { %p1163_p9 = pnand %p1162_p8, %p1156_p5 }
  0x35   :  { %1166 = shalt.err (!%p1163_p9)
}
  0x36   :  { %54 = dma.hbm_to_vmem [thread:$0]  %s1493_s3, 256, %s49_s16, [#allocation6], %s1197_s1, %s1197_s1, %s1198_s11  }
  0x37   :  { %s1167_s28 = scalar_lea.hbm %s1495_s5, 512 }
  0x38   :  { %p1168_p10 = scmp.ne.s32.totalorder %s1495_s5, %s1167_s28  ;;  %p1171_p11 = scmp.lt.u32.totalorder %s1167_s28, %s1495_s5 }
  0x3a   :  { %p1173_p12 = pnand %p1171_p11, %p1168_p10 }
  0x3c   :  { %1176 = shalt.err (!%p1173_p12)
}
  0x3d   :  { %s1177_s13 = scalar_lea.vmem %s1293_s18, 512  ;;  %p1182_p0 = scmp.lt.s32.totalorder %s1293_s18, %s1293_s18 }
  0x3e   :  { %p1178_p13 = scmp.ne.s32.totalorder %s1293_s18, %s1177_s13  ;;  %p1183_p1 = scmp.lt.s32.totalorder %s1177_s13, %s1177_s13 }
  0x40   :  { %p1184_p2 = por %p1183_p1, %p1182_p0 }
  0x42   :  { %p1185_p3 = pnand %p1184_p2, %p1178_p13 }
  0x44   :  { %1188 = shalt.err (!%p1185_p3)
}
  0x45   :  { %s1201_s3 = smov 128   ;;  %s1202_s11 = smov 8  }
  0x46   :  { %68 = dma.hbm_to_vmem [thread:$0]  %s1495_s5, 512, %s1293_s18, [#allocation9], %s1201_s3, %s1201_s3, %s1202_s11  }
  0x47   :  { %1189 = dma.done.wait [#allocation4], 512  }
  0x48   :  { %1190 = vsyncadd [#allocation4], 4294966784 }
  0x49   :  { %1191 = dma.done.wait [#allocation6], 384  }
  0x4a   :  { %1192 = vsyncadd [#allocation6], 4294966912 }
  0x4b   :  { %1193 = dma.done.wait [#allocation9], 512  }
  0x4c   :  { %1194 = vsyncadd [#allocation9], 4294966784  ;;  %v1203_v1 = vmov 0.0   ;;  %vm1204_vm0 = vmmov 0   ;;  %v1062_v2 = vld [vmem:[%s1492_s2] sm:$0xff]   ;;  %v1332_v3 = vld [vmem:[#allocation7] sm:$0xff]   ;;  %v213_v20 = vlaneseq }
  0x4d   :  { %969 = vmatprep.subr.bf16.mxu1 %v1203_v1  ;;  %973 = vmatprep.mubr.msk.bf16.mxu1 %vm1204_vm0, %v1203_v1  ;;  %vm131_vm1 = vcmask 130048   ;;  %v1064_v4 = vld [vmem:[#allocation3] sm:$0xff]   ;;  %v1065_v5 = vld [vmem:[#allocation3 + $0x8] sm:$0xff]   ;;  %v1337_v6 = vld [vmem:[#allocation7 + $0x8] sm:$0xff]   ;;  %vm232_vm2 = vcmask 261120   ;;  %vm892_vm6 = vcmask 7168  }
  0x4e   :  { %959 = vmatprep.subr.bf16.mxu0 %v1062_v2  ;;  %970 = vmatpush3.bf16.msra.mxu1 %v1332_v3  ;;  %v218_v7 = vld [vmem:[#allocation5] sm:$0xff]  ;;  %v1357_v9 = vld [vmem:[%s1494_s4] ss:$0 sm:$0xff]  ;;  %v214_v21 = vand.u32 127, %v213_v20  ;;  %s1205_s4 = smov 32   ;;  %v1067_v53 = vld [vmem:[#allocation3 + $0x10] sm:$0xff]  }
  0x4f   :  { %960 = vmatpush3.bf16.msra.mxu0 %v1062_v2  ;;  %961 = vmatprep.mubr.msk.bf16.mxu0 %vm131_vm1, %v1064_v4  ;;  %v219_v8 = vpack.c.bf16 %v218_v7, %v218_v7  ;;  %v1068_v54 = vld [vmem:[#allocation3 + $0x18] sm:$0xff]  }
  0x50   :  { %971 = vmatprep.subr.bf16.mxu1 %v1203_v1  ;;  %985 = vmatprep.subr.bf16.mxu0 %v1203_v1  ;;  %vm215_vm3 = vcmp.ge.s32.totalorder %v214_v21, 64  ;;  %vm216_vm4 = vcmp.lt.s32.totalorder %v214_v21, 96 }
  0x51   :  { %vm1364_vm5 = vmand %vm215_vm3, %vm216_vm4 }
  0x52   :  { %962 = vmatmul.mubr.msk.bf16.vlgmr.msra.gmra.mrb[0].mxu0 %vm131_vm1, %v1065_v5  ;;  %972 = vmatpush3.bf16.msra.mxu1 %v1337_v6 }
  0x53   :  { %986 = vmatpush3.bf16.msra.mxu0 %v1332_v3  ;;  %977 = vmatprep.subr.bf16.mxu1 %v1203_v1 }
  0x54   :  { %987 = vmatprep.subr.bf16.mxu0 %v1203_v1  ;;  %965 = vmatprep.mubr.msk.bf16.mxu0 %vm131_vm1, %v1067_v53 }
  0x55   :  { %974 = vmatmul.mubr.msk.bf16.vlgmr.msra.gmra.mrb[0].mxu1 %vm232_vm2, %v219_v8 }
  0x56   :  { %978 = vmatpush3.bf16.msra.mxu1 %v1332_v3  ;;  %981 = vmatprep.mubr.msk.bf16.mxu1 %vm1204_vm0, %v1203_v1 }
  0x57   :  { %979 = vmatprep.subr.bf16.mxu1 %v1203_v1  ;;  %988 = vmatpush3.bf16.msra.mxu0 %v1337_v6 }
  0x58   :  { %1001 = vmatprep.subr.bf16.mxu0 %v1203_v1 }
  0x5a   :  { %980 = vmatpush3.bf16.msra.mxu1 %v1337_v6  ;;  %966 = vmatmul.mubr.msk.bf16.gmra.mrb[4].mxu0 %vm131_vm1, %v1068_v54 }
  0x5b   :  { %993 = vmatprep.subr.bf16.mxu1 %v1203_v1  ;;  %989 = vmatprep.mubr.msk.bf16.mxu0 %vm1204_vm0, %v1203_v1 }
 0x125   :  { %v1359_v10 = vpop.f32.mrb[0].mxu0 }
 0x126   :  { %v178_v11 = vpop.f32.mrb[1].mxu0  ;;  %v187_v0 = vadd.f32 %v1359_v10, %v1357_v9 }
 0x127   :  { %v179_v12 = vadd.f32 %v1357_v9, %v178_v11  ;;  %v1362_v13 = vpop.f32.mrb[2].mxu0 }
 0x128   :  { %v181_v14 = vpop.f32.mrb[3].mxu0  ;;  %v270_v15 = vpop.f32.mrb[0].mxu1 }
 0x129   :  { %v276_v16 = vadd.f32 %v270_v15, %v179_v12  ;;  %v975_v17 = vpop.f32.mrb[1].mxu1  ;;  %v182_v38 = vadd.f32 %v1357_v9, %v181_v14 }
 0x12a   :  { %v273_v18 = vpop.f32.mrb[2].mxu1 }
 0x12b   :  { %1069 = vtanh.f32 %v276_v16  ;;  %v976_v19 = vpop.f32.mrb[3].mxu1 }
 0x12d   :  { %v1393_v59 = vpop.f32.mrb[4].mxu0 }
 0x12e   :  { %v1395_v60 = vpop.f32.mrb[5].mxu0 }
 0x12f   :  { %v1397_v61 = vpop.f32.mrb[6].mxu0 }
 0x130   :  { %v1399_v62 = vpop.f32.mrb[7].mxu0 }
 0x135   :  { %v1070_v22 = vpop.eup %1069 }
 0x136   :  { %v278_v23 = vmul.f32 0.5, %v1070_v22 }
 0x138   :  { %v279_v25 = vadd.f32 0.5, %v278_v23 }
 0x13a   :  { %v280_v26 = vsel %vm1364_vm5, %v1070_v22, %v279_v25 }
 0x13b   :  { %287 = vrot.lane.b32.xlu0 %v280_v26, %s1197_s1 }
 0x13f   :  { %282 = vrot.lane.b32.xlu0 %v218_v7, %s1205_s4 }
 0x1ad   :  { %v288_v27 = vpop.permute.xlu0 %287 }
 0x1ae   :  { %v290_v28 = vmul.f32 %v288_v27, %v280_v26 }
 0x1b0   :  { %292 = vrot.lane.b32.xlu1 %v290_v28, %s1205_s4 }
 0x1b1   :  { %v283_v29 = vpop.permute.xlu0 %282 }
 0x1b2   :  { %v285_v30 = vmul.f32 %v283_v29, %v280_v26 }
 0x222   :  { %v293_v31 = vpop.permute.xlu1 %292 }
 0x223   :  { %v295_v32 = vadd.f32 %v293_v31, %v285_v30 }
 0x225   :  { %1071 = vtanh.f32 %v295_v32 }
 0x22f   :  { %v1072_v33 = vpop.eup %1071 }
 0x230   :  { %298 = vrot.lane.b32.xlu1 %v1072_v33, %s1197_s1 }
 0x2a2   :  { %v299_v34 = vpop.permute.xlu1 %298 }
 0x2a3   :  { %v301_v35 = vmul.f32 %v299_v34, %v280_v26  ;;  %v190_v26 = vadd.f32 %v1362_v13, %v1357_v9 }
 0x2a5   :  { %v302_v36 = vpack.c.bf16 %v301_v35, %v301_v35 }
 0x2a7   :  { %304 = vrot.lane.b32.xlu0 %v302_v36, %s1205_s4 }
 0x319   :  { %v305_v37 = vpop.permute.xlu0 %304 }
 0x31a   :  { %982 = vmatmul.mubr.msk.bf16.vlgmr.msra.gmra.mrb[4].mxu1 %vm232_vm2, %v305_v37 }
 0x31b   :  { %994 = vmatpush3.bf16.msra.mxu1 %v1332_v3  ;;  %997 = vmatprep.mubr.msk.bf16.mxu1 %vm1204_vm0, %v1203_v1 }
 0x31c   :  { %995 = vmatprep.subr.bf16.mxu1 %v1203_v1 }
 0x31f   :  { %996 = vmatpush3.bf16.msra.mxu1 %v1337_v6 }
 0x320   :  { %1009 = vmatprep.subr.bf16.mxu1 %v1203_v1 }
 0x3ed   :  { %v343_v39 = vpop.f32.mrb[4].mxu1 }
 0x3ee   :  { %v349_v40 = vadd.f32 %v343_v39, %v182_v38  ;;  %v983_v41 = vpop.f32.mrb[5].mxu1 }
 0x3ef   :  { %v346_v42 = vpop.f32.mrb[6].mxu1 }
 0x3f0   :  { %1073 = vtanh.f32 %v349_v40  ;;  %v984_v43 = vpop.f32.mrb[7].mxu1 }
 0x3fa   :  { %v1074_v44 = vpop.eup %1073 }
 0x3fb   :  { %v351_v45 = vmul.f32 0.5, %v1074_v44 }
 0x3fd   :  { %v352_v46 = vadd.f32 0.5, %v351_v45  ;;  %v195_v45 = vadd.f32 %v1357_v9, %v1395_v60 }
 0x3ff   :  { %v353_v47 = vsel %vm1364_vm5, %v1074_v44, %v352_v46 }
 0x400   :  { %356 = vrot.lane.b32.xlu1 %v353_v47, %s1197_s1  ;;  %v354_v50 = vmul.f32 %v353_v47, %v295_v32 }
 0x472   :  { %v357_v48 = vpop.permute.xlu1 %356 }
 0x473   :  { %v359_v49 = vmul.f32 %v357_v48, %v353_v47 }
 0x475   :  { %361 = vrot.lane.b32.xlu0 %v359_v49, %s1205_s4 }
 0x4e7   :  { %v362_v51 = vpop.permute.xlu0 %361 }
 0x4e8   :  { %v364_v52 = vadd.f32 %v362_v51, %v354_v50 }
 0x4ea   :  { %1075 = vtanh.f32 %v364_v52 }
 0x4f4   :  { %v1076_v55 = vpop.eup %1075 }
 0x4f5   :  { %367 = vrot.lane.b32.xlu1 %v1076_v55, %s1197_s1 }
 0x567   :  { %v368_v56 = vpop.permute.xlu1 %367 }
 0x568   :  { %v370_v57 = vmul.f32 %v368_v56, %v353_v47 }
 0x56a   :  { %v371_v58 = vpack.c.bf16 %v370_v57, %v370_v57 }
 0x56c   :  { %373 = vrot.lane.b32.xlu0 %v371_v58, %s1205_s4 }
 0x5de   :  { %v374_v63 = vpop.permute.xlu0 %373 }
 0x5df   :  { %990 = vmatmul.mubr.msk.bf16.vlgmr.msra.gmra.mrb[8].mxu0 %vm232_vm2, %v374_v63 }
 0x5e0   :  { %1002 = vmatpush3.bf16.msra.mxu0 %v1332_v3  ;;  %1005 = vmatprep.mubr.msk.bf16.mxu0 %vm1204_vm0, %v1203_v1 }
 0x5e1   :  { %1003 = vmatprep.subr.bf16.mxu0 %v1203_v1 }
 0x5e4   :  { %1004 = vmatpush3.bf16.msra.mxu0 %v1337_v6 }
 0x5e5   :  { %1017 = vmatprep.subr.bf16.mxu0 %v1203_v1 }
 0x6b2   :  { %v412_v2 = vpop.f32.mrb[8].mxu0 }
 0x6b3   :  { %v418_v4 = vadd.f32 %v412_v2, %v187_v0  ;;  %v991_v5 = vpop.f32.mrb[9].mxu0 }
 0x6b4   :  { %v415_v7 = vpop.f32.mrb[10].mxu0 }
 0x6b5   :  { %1077 = vtanh.f32 %v418_v4  ;;  %v992_v8 = vpop.f32.mrb[11].mxu0  ;;  %v198_v7 = vadd.f32 %v1357_v9, %v1399_v62 }
 0x6bf   :  { %v1078_v11 = vpop.eup %1077 }
 0x6c0   :  { %v420_v12 = vmul.f32 0.5, %v1078_v11 }
 0x6c2   :  { %v421_v14 = vadd.f32 0.5, %v420_v12 }
 0x6c4   :  { %v422_v15 = vsel %vm1364_vm5, %v1078_v11, %v421_v14 }
 0x6c5   :  { %425 = vrot.lane.b32.xlu1 %v422_v15, %s1197_s1  ;;  %v423_v18 = vmul.f32 %v422_v15, %v364_v52 }
 0x737   :  { %v426_v16 = vpop.permute.xlu1 %425 }
 0x738   :  { %v428_v17 = vmul.f32 %v426_v16, %v422_v15 }
 0x73a   :  { %430 = vrot.lane.b32.xlu0 %v428_v17, %s1205_s4 }
 0x7ac   :  { %v431_v10 = vpop.permute.xlu0 %430 }
 0x7ad   :  { %v433_v19 = vadd.f32 %v431_v10, %v423_v18 }
 0x7af   :  { %1079 = vtanh.f32 %v433_v19 }
 0x7b9   :  { %v1080_v20 = vpop.eup %1079 }
 0x7ba   :  { %436 = vrot.lane.b32.xlu1 %v1080_v20, %s1197_s1 }
 0x82c   :  { %v437_v21 = vpop.permute.xlu1 %436 }
 0x82d   :  { %v439_v22 = vmul.f32 %v437_v21, %v422_v15 }
 0x82f   :  { %v440_v23 = vpack.c.bf16 %v439_v22, %v439_v22 }
 0x831   :  { %442 = vrot.lane.b32.xlu0 %v440_v23, %s1205_s4 }
 0x8a3   :  { %v443_v25 = vpop.permute.xlu0 %442 }
 0x8a4   :  { %998 = vmatmul.mubr.msk.bf16.vlgmr.msra.gmra.mrb[8].mxu1 %vm232_vm2, %v443_v25 }
 0x8a5   :  { %1010 = vmatpush3.bf16.msra.mxu1 %v1332_v3  ;;  %1013 = vmatprep.mubr.msk.bf16.mxu1 %vm1204_vm0, %v1203_v1 }
 0x8a6   :  { %1011 = vmatprep.subr.bf16.mxu1 %v1203_v1 }
 0x8a9   :  { %1012 = vmatpush3.bf16.msra.mxu1 %v1337_v6 }
 0x8aa   :  { %1025 = vmatprep.subr.bf16.mxu1 %v1203_v1 }
 0x977   :  { %v481_v27 = vpop.f32.mrb[8].mxu1 }
 0x978   :  { %v487_v28 = vadd.f32 %v481_v27, %v190_v26  ;;  %v999_v29 = vpop.f32.mrb[9].mxu1  ;;  %v203_v27 = vadd.f32 %v1393_v59, %v1357_v9 }
 0x979   :  { %v484_v30 = vpop.f32.mrb[10].mxu1 }
 0x97a   :  { %1081 = vtanh.f32 %v487_v28  ;;  %v1000_v31 = vpop.f32.mrb[11].mxu1 }
 0x984   :  { %v1082_v32 = vpop.eup %1081 }
 0x985   :  { %v489_v33 = vmul.f32 0.5, %v1082_v32 }
 0x987   :  { %v490_v34 = vadd.f32 0.5, %v489_v33 }
 0x989   :  { %v491_v35 = vsel %vm1364_vm5, %v1082_v32, %v490_v34 }
 0x98a   :  { %494 = vrot.lane.b32.xlu1 %v491_v35, %s1197_s1  ;;  %v492_v38 = vmul.f32 %v491_v35, %v433_v19 }
 0x9fc   :  { %v495_v36 = vpop.permute.xlu1 %494 }
 0x9fd   :  { %v497_v37 = vmul.f32 %v495_v36, %v491_v35 }
 0x9ff   :  { %499 = vrot.lane.b32.xlu0 %v497_v37, %s1205_s4 }
 0xa71   :  { %v500_v13 = vpop.permute.xlu0 %499 }
 0xa72   :  { %v502_v39 = vadd.f32 %v500_v13, %v492_v38 }
 0xa74   :  { %1083 = vtanh.f32 %v502_v39 }
 0xa7e   :  { %v1084_v40 = vpop.eup %1083 }
 0xa7f   :  { %505 = vrot.lane.b32.xlu1 %v1084_v40, %s1197_s1 }
 0xaf1   :  { %v506_v41 = vpop.permute.xlu1 %505 }
 0xaf2   :  { %v508_v42 = vmul.f32 %v506_v41, %v491_v35 }
 0xaf4   :  { %v509_v43 = vpack.c.bf16 %v508_v42, %v508_v42 }
 0xaf6   :  { %511 = vrot.lane.b32.xlu0 %v509_v43, %s1205_s4 }
 0xb68   :  { %v512_v44 = vpop.permute.xlu0 %511 }
 0xb69   :  { %1006 = vmatmul.mubr.msk.bf16.vlgmr.msra.gmra.mrb[12].mxu0 %vm232_vm2, %v512_v44  ;;  %v206_v44 = vadd.f32 %v1397_v61, %v1357_v9 }
 0xb6a   :  { %1018 = vmatpush3.bf16.msra.mxu0 %v1332_v3  ;;  %1021 = vmatprep.mubr.msk.bf16.mxu0 %vm1204_vm0, %v1203_v1 }
 0xb6b   :  { %1019 = vmatprep.subr.bf16.mxu0 %v1203_v1 }
 0xb6e   :  { %1020 = vmatpush3.bf16.msra.mxu0 %v1337_v6 }
 0xc3c   :  { %v550_v46 = vpop.f32.mrb[12].mxu0 }
 0xc3d   :  { %v556_v47 = vadd.f32 %v550_v46, %v195_v45  ;;  %v1007_v48 = vpop.f32.mrb[13].mxu0 }
 0xc3e   :  { %v553_v49 = vpop.f32.mrb[14].mxu0 }
 0xc3f   :  { %1085 = vtanh.f32 %v556_v47  ;;  %v1008_v50 = vpop.f32.mrb[15].mxu0 }
 0xc49   :  { %v1086_v51 = vpop.eup %1085 }
 0xc4a   :  { %v558_v52 = vmul.f32 0.5, %v1086_v51 }
 0xc4c   :  { %v559_v53 = vadd.f32 0.5, %v558_v52 }
 0xc4e   :  { %v560_v54 = vsel %vm1364_vm5, %v1086_v51, %v559_v53 }
 0xc4f   :  { %563 = vrot.lane.b32.xlu1 %v560_v54, %s1197_s1  ;;  %v561_v57 = vmul.f32 %v560_v54, %v502_v39 }
 0xcc1   :  { %v564_v55 = vpop.permute.xlu1 %563 }
 0xcc2   :  { %v566_v56 = vmul.f32 %v564_v55, %v560_v54 }
 0xcc4   :  { %568 = vrot.lane.b32.xlu0 %v566_v56, %s1205_s4 }
 0xd36   :  { %v569_v58 = vpop.permute.xlu0 %568 }
 0xd37   :  { %v571_v60 = vadd.f32 %v569_v58, %v561_v57  ;;  %v786_v57 = vld [vmem:[#allocation8] sm:$0xff]  ;;  %v787_v58 = vld [vmem:[#allocation8 + $0x8] sm:$0xff] }
 0xd39   :  { %1087 = vtanh.f32 %v571_v60 }
 0xd43   :  { %v1088_v63 = vpop.eup %1087 }
 0xd44   :  { %574 = vrot.lane.b32.xlu1 %v1088_v63, %s1197_s1  ;;  %v1206_v63 = vmov 0.0|0.0  }
 0xd45   :  { %1044 = vmatprep.subr.bf16.mxu0 %v1206_v63 }
 0xdb6   :  { %v575_v0 = vpop.permute.xlu1 %574 }
 0xdb7   :  { %v577_v2 = vmul.f32 %v575_v0, %v560_v54  ;;  %v1045_v0 = vpack.c.bf16 %v787_v58, %v786_v57 }
 0xdb9   :  { %v578_v4 = vpack.c.bf16 %v577_v2, %v577_v2  ;;  %v789_v2 = vld [vmem:[#allocation8 + $0x18] sm:$0xff] }
 0xdbb   :  { %580 = vrot.lane.b32.xlu0 %v578_v4, %s1205_s4 }
 0xe2d   :  { %v581_v5 = vpop.permute.xlu0 %580 }
 0xe2e   :  { %1014 = vmatmul.mubr.msk.bf16.vlgmr.msra.gmra.mrb[12].mxu1 %vm232_vm2, %v581_v5 }
 0xe2f   :  { %1026 = vmatpush3.bf16.msra.mxu1 %v1332_v3  ;;  %1029 = vmatprep.mubr.msk.bf16.mxu1 %vm1204_vm0, %v1203_v1 }
 0xe30   :  { %1027 = vmatprep.subr.bf16.mxu1 %v1203_v1 }
 0xe33   :  { %1028 = vmatpush3.bf16.msra.mxu1 %v1337_v6 }
 0xf01   :  { %v619_v8 = vpop.f32.mrb[12].mxu1 }
 0xf02   :  { %v625_v11 = vadd.f32 %v619_v8, %v198_v7  ;;  %v1015_v12 = vpop.f32.mrb[13].mxu1 }
 0xf03   :  { %v622_v14 = vpop.f32.mrb[14].mxu1  ;;  %v921_v12 = vld [vmem:[%s1496_s6] ss:$0 sm:$0xff] }
 0xf04   :  { %1089 = vtanh.f32 %v625_v11  ;;  %v1016_v15 = vpop.f32.mrb[15].mxu1 }
 0xf0e   :  { %v1090_v16 = vpop.eup %1089 }
 0xf0f   :  { %v627_v17 = vmul.f32 0.5, %v1090_v16 }
 0xf11   :  { %v628_v18 = vadd.f32 0.5, %v627_v17  ;;  %v923_v17 = vld [vmem:[%s1497_s7] ss:$0 sm:$0xff] }
 0xf13   :  { %v629_v3 = vsel %vm1364_vm5, %v1090_v16, %v628_v18 }
 0xf14   :  { %632 = vrot.lane.b32.xlu1 %v629_v3, %s1197_s1  ;;  %v630_v6 = vmul.f32 %v629_v3, %v571_v60  ;;  %v788_v60 = vld [vmem:[#allocation8 + $0x10] sm:$0xff] }
 0xf15   :  { %v1048_v24 = vpack.c.bf16 %v789_v2, %v788_v60 }
 0xf86   :  { %v633_v10 = vpop.permute.xlu1 %632 }
 0xf87   :  { %v635_v19 = vmul.f32 %v633_v10, %v629_v3 }
 0xf89   :  { %637 = vrot.lane.b32.xlu0 %v635_v19, %s1205_s4  ;;  %v924_v19 = vld [vmem:[#allocation2] ss:$0 sm:$0xff] }
 0xffb   :  { %v638_v62 = vpop.permute.xlu0 %637 }
 0xffc   :  { %v640_v20 = vadd.f32 %v638_v62, %v630_v6 }
 0xffe   :  { %1091 = vtanh.f32 %v640_v20 }
0x1008   :  { %v1092_v21 = vpop.eup %1091 }
0x1009   :  { %643 = vrot.lane.b32.xlu1 %v1092_v21, %s1197_s1 }
0x107b   :  { %v644_v22 = vpop.permute.xlu1 %643 }
0x107c   :  { %v646_v23 = vmul.f32 %v644_v22, %v629_v3 }
0x107e   :  { %v647_v25 = vpack.c.bf16 %v646_v23, %v646_v23 }
0x1080   :  { %649 = vrot.lane.b32.xlu0 %v647_v25, %s1205_s4 }
0x10f2   :  { %v650_v26 = vpop.permute.xlu0 %649 }
0x10f3   :  { %1022 = vmatmul.mubr.msk.bf16.vlgmr.msra.gmra.mrb[16].mxu0 %vm232_vm2, %v650_v26 }
0x10f4   :  { %1041 = vmatprep.mubr.msk.f32.mxu0 %vm1204_vm0, %v1203_v1  ;;  %1046 = vmatpush3.bf16.msra.mxu0 %v1045_v0 }
0x10f5   :  { %1047 = vmatprep.subr.bf16.mxu0 %v1206_v63 }
0x10f8   :  { %1049 = vmatpush3.bf16.msra.mxu0 %v1048_v24 }
0x11c6   :  { %v688_v28 = vpop.f32.mrb[16].mxu0 }
0x11c7   :  { %v694_v29 = vadd.f32 %v688_v28, %v203_v27  ;;  %v1023_v30 = vpop.f32.mrb[17].mxu0 }
0x11c8   :  { %v691_v31 = vpop.f32.mrb[18].mxu0 }
0x11c9   :  { %1093 = vtanh.f32 %v694_v29  ;;  %v1024_v32 = vpop.f32.mrb[19].mxu0 }
0x11d3   :  { %v1094_v33 = vpop.eup %1093 }
0x11d4   :  { %v696_v34 = vmul.f32 0.5, %v1094_v33 }
0x11d6   :  { %v697_v35 = vadd.f32 0.5, %v696_v34 }
0x11d8   :  { %v698_v36 = vsel %vm1364_vm5, %v1094_v33, %v697_v35 }
0x11d9   :  { %701 = vrot.lane.b32.xlu1 %v698_v36, %s1197_s1  ;;  %v699_v1 = vmul.f32 %v698_v36, %v640_v20 }
0x124b   :  { %v702_v37 = vpop.permute.xlu1 %701 }
0x124c   :  { %v704_v38 = vmul.f32 %v702_v37, %v698_v36 }
0x124e   :  { %706 = vrot.lane.b32.xlu0 %v704_v38, %s1205_s4 }
0x12c0   :  { %v707_v59 = vpop.permute.xlu0 %706 }
0x12c1   :  { %v709_v13 = vadd.f32 %v707_v59, %v699_v1 }
0x12c3   :  { %1095 = vtanh.f32 %v709_v13 }
0x12cd   :  { %v1096_v39 = vpop.eup %1095 }
0x12ce   :  { %712 = vrot.lane.b32.xlu1 %v1096_v39, %s1197_s1 }
0x1340   :  { %v713_v40 = vpop.permute.xlu1 %712 }
0x1341   :  { %v715_v41 = vmul.f32 %v713_v40, %v698_v36 }
0x1343   :  { %v716_v42 = vpack.c.bf16 %v715_v41, %v715_v41 }
0x1345   :  { %718 = vrot.lane.b32.xlu0 %v716_v42, %s1205_s4 }
0x13b7   :  { %v719_v43 = vpop.permute.xlu0 %718 }
0x13b8   :  { %1030 = vmatmul.mubr.msk.bf16.vlgmr.msra.gmra.mrb[16].mxu1 %vm232_vm2, %v719_v43 }
0x148b   :  { %v757_v45 = vpop.f32.mrb[16].mxu1 }
0x148c   :  { %v763_v46 = vadd.f32 %v757_v45, %v206_v44  ;;  %v1031_v47 = vpop.f32.mrb[17].mxu1 }
0x148d   :  { %v760_v48 = vpop.f32.mrb[18].mxu1 }
0x148e   :  { %1097 = vtanh.f32 %v763_v46  ;;  %v1032_v49 = vpop.f32.mrb[19].mxu1 }
0x1498   :  { %v1098_v50 = vpop.eup %1097 }
0x1499   :  { %v765_v51 = vmul.f32 0.5, %v1098_v50 }
0x149b   :  { %v766_v52 = vadd.f32 0.5, %v765_v51 }
0x149d   :  { %v767_v53 = vsel %vm1364_vm5, %v1098_v50, %v766_v52 }
0x149e   :  { %770 = vrot.lane.b32.xlu1 %v767_v53, %s1197_s1  ;;  %v768_v56 = vmul.f32 %v767_v53, %v709_v13 }
0x1510   :  { %v771_v54 = vpop.permute.xlu1 %770 }
0x1511   :  { %v773_v55 = vmul.f32 %v771_v54, %v767_v53 }
0x1513   :  { %775 = vrot.lane.b32.xlu0 %v773_v55, %s1205_s4 }
0x1585   :  { %v776_v9 = vpop.permute.xlu0 %775 }
0x1586   :  { %v778_v61 = vadd.f32 %v776_v9, %v768_v56 }
0x1588   :  { %1099 = vtanh.f32 %v778_v61 }
0x1592   :  { %v1100_v4 = vpop.eup %1099 }
0x1593   :  { %781 = vrot.lane.b32.xlu1 %v1100_v4, %s1197_s1 }
0x1605   :  { %v782_v5 = vpop.permute.xlu1 %781 }
0x1606   :  { %v784_v7 = vmul.f32 %v782_v5, %v767_v53 }
0x1608   :  { %v785_v8 = vmax.f32 %v784_v7, 0.0 }
0x160a   :  { %798 = vrot.lane.b32.xlu0 %v785_v8, %s1205_s4 }
0x167c   :  { %v799_v11 = vpop.permute.xlu0 %798 }
0x167d   :  { %1042 = vmatmul.mubr.msk.f32.vlgmr.msra.gmra.mrb[20].mxu0 %vm232_vm2, %v799_v11 }
0x1750   :  { %v868_v14 = vpop.f32.mrb[20].mxu0 }
0x1751   :  { %v869_v15 = vadd.f32 %v921_v12, %v868_v14  ;;  %v1043_v16 = vpop.f32.mrb[21].mxu0 }
0x1753   :  { %v872_v18 = vmax.f32 %v869_v15, 0.0 }
0x1755   :  { %v880_v3 = vmul.f32 %v923_v17, %v872_v18 }
0x1757   :  { %v881_v10 = vsel %vm232_vm2, %v880_v3, 0.0 }
0x1758   :  { %882 = vadd.xlane.f32.xlu1 %v881_v10 }
0x17e5   :  { %v883_v6 = vpop.xlane.xlu1 %882 }
0x17e6   :  { %v891_v62 = vadd.f32 %v924_v19, %v883_v6 }
0x17e8   :  { %893 = vst.msk [vmem:[%s1499_s9] sm:$0xff] %vm892_vm6, %v891_v62 }
0x17e9   :  { %898 = vsyncpa [#allocation4], 1 }
0x17ea   :  { %899 = vsyncpa [#allocation6], 1 }
0x17eb   :  { %900 = vsyncpa [#allocation9], 1 }

</bundles_post_ra>
